<compile_context>
chip_gen: v7x
topology: tpu7x:2x2x1
jax: 0.10.0
libtpu: 0.0.40
codegen_flags: <defaults>
</compile_context>

<pallas_src>
import jax
import jax.numpy as jnp
from jax.experimental import pallas as pl
from jax.experimental.pallas import tpu as pltpu

EPS = 1e-5
_LANE = 128
_SUBLANE = 8


def _round_up(x, m):
    return (x + m - 1) // m * m


def _vmem_limit(est_bytes):
    """Generation-aware scoped-VMEM limit (None = leave the compiler default)."""
    if est_bytes <= 12 * 2**20:
        return None
    try:
        cap = int(getattr(pltpu.get_tpu_info(), "vmem_capacity_bytes", 64 * 2**20))
    except Exception:  # interpret mode / older runtimes
        cap = 64 * 2**20
    # keep ~15% headroom for compiler-internal scratch and spill buffers
    return int(min(est_bytes + 16 * 2**20, int(cap * 0.85)))


# --------------------------- pass 1 -----------------------------------------
# conv1x1 (MXU) + PReLU1 + per-lane gLN1 partial sums, tiled over time.
def _make_pass1_kernel(t_tile, t_true, need_mask):
    def kernel(x_ref, w1_ref, p1_ref, y_ref, s_ref, q_ref):
        ti = pl.program_id(1)

        @pl.when(ti == 0)
        def _init():
            s_ref[...] = jnp.zeros_like(s_ref)
            q_ref[...] = jnp.zeros_like(q_ref)

        y = jnp.dot(x_ref[...], w1_ref[...], preferred_element_type=jnp.float32)
        y = y + p1_ref[0:1, :]                              # conv1x1 bias
        y = jnp.where(y >= 0.0, y, p1_ref[1:2, :] * y)      # PReLU1 (per-channel row)
        if need_mask:                                       # zero rows past the true T
            rows = ti * t_tile + jax.lax.broadcasted_iota(jnp.int32, y.shape, 0)
            y = jnp.where(rows < t_true, y, 0.0)
        # per-lane gLN1 partials (mostly VPU adds; final cross-lane reduce on host)
        s_ref[...] += jnp.sum(y, axis=0, keepdims=True)
        q_ref[...] += jnp.sum(y * y, axis=0, keepdims=True)
        y_ref[...] = y.astype(y_ref.dtype)

    return kernel


# --------------------------- pass 2 -----------------------------------------
# folded gLN1 (scale+shift) + depthwise conv from a halo'd time tile + PReLU2
# + per-lane gLN2 partial sums.  The halo (pad rows per side) comes from tiny
# precomputed arrays; the window is assembled in a VMEM scratch so each tap is
# a small sublane-offset slice (no full-length rolls, no per-tap masks).
def _make_pass2_kernel(K, dil, pad, ph, ph_r, t_tile, t_true, need_mask):
    def kernel(y_ref, lo_ref, hi_ref, st1_ref, dwp_ref, z_ref, s_ref, q_ref, ext_ref):
        ti = pl.program_id(1)
        f32 = jnp.float32

        @pl.when(ti == 0)
        def _init():
            s_ref[...] = jnp.zeros_like(s_ref)
            q_ref[...] = jnp.zeros_like(q_ref)

        s1 = st1_ref[0:1, :]
        t1 = st1_ref[1:2, :]

        # main tile: gLN1 as scale + shift (+ tail mask, last tile only matters)
        yn = y_ref[...].astype(f32) * s1 + t1               # (t_tile, Cc_p)
        if need_mask:
            rows = ti * t_tile + jax.lax.broadcasted_iota(jnp.int32, yn.shape, 0)
            yn = jnp.where(rows < t_true, yn, 0.0)

        # halo rows (pad rows per side): gLN1 + validity mask on tiny tiles only
        lo = lo_ref[...].astype(f32) * s1 + t1               # (ph, Cc_p)
        g_lo = (ti * t_tile - ph) + jax.lax.broadcasted_iota(jnp.int32, lo.shape, 0)
        lo = jnp.where(g_lo >= 0, lo, 0.0)
        hi = hi_ref[...].astype(f32) * s1 + t1               # (ph, Cc_p)
        g_hi = (ti + 1) * t_tile + jax.lax.broadcasted_iota(jnp.int32, hi.shape, 0)
        hi = jnp.where(g_hi < t_true, hi, 0.0)

        # assemble halo'd window in VMEM scratch: [.., lo, | main (aligned) |, hi]
        ext_ref[ph_r - ph:ph_r, :] = lo
        ext_ref[ph_r:ph_r + t_tile, :] = yn
        ext_ref[ph_r + t_tile:ph_r + t_tile + ph, :] = hi

        acc = None
        for k in range(K):                                   # K is tiny; static unroll
            off = k * dil - pad                              # tap reads yn[t + off]
            tap = ext_ref[ph_r + off:ph_r + off + t_tile, :]
            term = tap * dwp_ref[k:k + 1, :]
            acc = term if acc is None else acc + term
        acc = acc + dwp_ref[K:K + 1, :]                      # depthwise bias

        z = jnp.where(acc >= 0.0, acc, dwp_ref[K + 1:K + 2, :] * acc)   # PReLU2
        if need_mask:
            rows = ti * t_tile + jax.lax.broadcasted_iota(jnp.int32, z.shape, 0)
            z = jnp.where(rows < t_true, z, 0.0)
        s_ref[...] += jnp.sum(z, axis=0, keepdims=True)      # gLN2 partials
        q_ref[...] += jnp.sum(z * z, axis=0, keepdims=True)
        z_ref[...] = z.astype(z_ref.dtype)

    return kernel


# --------------------------- pass 3 -----------------------------------------
# gLN2 scale (VPU) + sconv against a SHARED resident weight (MXU) + folded
# shift/bias + residual.
def _make_pass3_kernel(cdtype):
    def kernel(z_ref, s2_ref, ws_ref, bsf_ref, x_ref, o_ref):
        zn = (z_ref[...].astype(jnp.float32) * s2_ref[...]).astype(cdtype)
        out = jnp.dot(zn, ws_ref[...], preferred_element_type=jnp.float32)
        o_ref[...] = (out + bsf_ref[...] + x_ref[...]).astype(o_ref.dtype)

    return kernel


def tcn_block_pallas_time_major(x_btc, params, *, kernel_size, dilation,
                                compute_dtype=jnp.bfloat16, t_tile=512):
    """TCNBlock forward on time-major input x_btc: (B, T, Cin) float32."""
    (w1, b1, a1, g1, be1, wd, bd, a2, g2, be2, ws, bs) = params
    B, T, Cin = x_btc.shape
    Cc = w1.shape[1]
    K = kernel_size
    pad = dilation * (K - 1) // 2
    # 'same' output length only holds when dilation*(K-1) is even (true for odd K).
    assert dilation * (K - 1) == 2 * pad, "dconv does not preserve sequence length"

    f32 = jnp.float32
    cdtype = jnp.dtype(compute_dtype)
    cb = cdtype.itemsize

    # ---- lane-dense channel padding + time tiling ---------------------------
    cin_p = _round_up(Cin, _LANE)
    cc_p = _round_up(Cc, _LANE)
    ph = max(pad, 1)                           # halo rows stored per side
    ph_r = _round_up(ph, _SUBLANE)             # aligned main-tile offset in scratch

    t_tile = _round_up(max(_SUBLANE, min(t_tile, _round_up(T, _SUBLANE))), _SUBLANE)
    t_tile = max(t_tile, _round_up(ph, _SUBLANE))   # halo must fit inside one tile
    t_pad = _round_up(T, t_tile)
    nt = t_pad // t_tile
    need_mask = t_pad > T

    # ---- pad params to lane-dense shapes (zeros keep the gLN sums exact) ----
    def pad_mat(a, r, c):
        a = jnp.asarray(a, f32)
        return jnp.pad(a, ((0, r - a.shape[0]), (0, c - a.shape[1])))

    def pad_vec(v, n):
        v = jnp.asarray(v, f32).reshape(-1)
        return jnp.pad(v, (0, n - v.shape[0]))

    def alpha_row(a, n_true, n_pad):           # supports scalar or per-channel PReLU
        a = jnp.asarray(a, f32).reshape(-1)
        a = jnp.broadcast_to(a, (n_true,))
        return pad_vec(a, n_pad)

    w1_p = pad_mat(w1, cin_p, cc_p).astype(cdtype)           # (Cin_p, Cc_p)
    ws_pf = pad_mat(ws, cc_p, cin_p)                         # (Cc_p, Cin_p), f32
    ws_c = ws_pf.astype(cdtype)                              # shared MXU operand
    b1_p = pad_vec(b1, cc_p)[None, :]
    bd_p = pad_vec(bd, cc_p)[None, :]
    bs_p = pad_vec(bs, cin_p)[None, :]
    g1_p, be1_p = pad_vec(g1, cc_p), pad_vec(be1, cc_p)
    g2_p, be2_p = pad_vec(g2, cc_p), pad_vec(be2, cc_p)
    wd_p = pad_mat(wd, K, cc_p)                              # (K, Cc_p)

    p1 = jnp.concatenate([b1_p, alpha_row(a1, Cc, cc_p)[None, :]], axis=0)   # [b1; a1]
    dwp = jnp.concatenate([wd_p, bd_p, alpha_row(a2, Cc, cc_p)[None, :]], axis=0)

    x_f32 = jnp.pad(x_btc.astype(f32),
                    ((0, 0), (0, t_pad - T), (0, cin_p - Cin)))   # residual (f32)
    x_c = x_f32.astype(cdtype)                                    # pass-1 read (bf16)

    n_elem = float(Cc * T)                                   # true gLN element count

    # ------------------------------ pass 1 -----------------------------------
    est1 = 2 * (t_tile * cin_p * cb + cin_p * cc_p * cb + 2 * cc_p * 4
                + t_tile * cc_p * cb + 4 * cc_p * 4) + 4 * t_tile * cc_p * 4
    y_p, s1a, q1a = pl.pallas_call(
        _make_pass1_kernel(t_tile, T, need_mask),
        grid=(B, nt),
        in_specs=[
            pl.BlockSpec((None, t_tile, cin_p), lambda b, i: (b, i, 0)),   # x (cdtype)
            pl.BlockSpec((cin_p, cc_p), lambda b, i: (0, 0)),              # W1 (resident)
            pl.BlockSpec((2, cc_p), lambda b, i: (0, 0)),                  # [b1; a1]
        ],
        out_specs=[
            pl.BlockSpec((None, t_tile, cc_p), lambda b, i: (b, i, 0)),    # y
            pl.BlockSpec((None, 1, cc_p), lambda b, i: (b, 0, 0)),         # gLN1 sum
            pl.BlockSpec((None, 1, cc_p), lambda b, i: (b, 0, 0)),         # gLN1 sumsq
        ],
        out_shape=[
            jax.ShapeDtypeStruct((B, t_pad, cc_p), cdtype),
            jax.ShapeDtypeStruct((B, 1, cc_p), f32),
            jax.ShapeDtypeStruct((B, 1, cc_p), f32),
        ],
        compiler_params=pltpu.CompilerParams(
            dimension_semantics=("parallel", "arbitrary"),
            vmem_limit_bytes=_vmem_limit(est1)),
    )(x_c, w1_p, p1)

    # fold gLN1 into a per-(batch, channel) scale + shift on the host
    sum1 = jnp.sum(s1a, axis=(1, 2))
    sq1 = jnp.sum(q1a, axis=(1, 2))
    mean1 = sum1 / n_elem
    var1 = jnp.maximum(sq1 / n_elem - mean1 * mean1, 0.0)    # clamp cancellation
    inv1 = jax.lax.rsqrt(var1 + EPS)                          # (B,)
    s1 = g1_p[None, :] * inv1[:, None]                        # (B, Cc_p)
    t1 = be1_p[None, :] - mean1[:, None] * s1
    st1 = jnp.stack([s1, t1], axis=1)                         # (B, 2, Cc_p)

    # tiny per-tile halo arrays (pad rows per side), zero at sequence ends
    y_r = y_p.reshape(B, nt, t_tile, cc_p)
    zhalo = jnp.zeros((B, 1, ph, cc_p), y_p.dtype)
    halo_lo = jnp.concatenate([zhalo, y_r[:, :-1, t_tile - ph:, :]], axis=1)
    halo_hi = jnp.concatenate([y_r[:, 1:, :ph, :], zhalo], axis=1)

    # ------------------------------ pass 2 -----------------------------------
    t_ext = ph_r + t_tile + ph_r
    est2 = 2 * (2 * t_tile * cc_p * cb + 2 * ph * cc_p * cb + (K + 4) * cc_p * 4
                + 4 * cc_p * 4) + 4 * t_tile * cc_p * 4 + t_ext * cc_p * 4
    z_p, s2a, q2a = pl.pallas_call(
        _make_pass2_kernel(K, dilation, pad, ph, ph_r, t_tile, T, need_mask),
        grid=(B, nt),
        in_specs=[
            pl.BlockSpec((None, t_tile, cc_p), lambda b, i: (b, i, 0)),       # y
            pl.BlockSpec((None, None, ph, cc_p), lambda b, i: (b, i, 0, 0)),  # halo lo
            pl.BlockSpec((None, None, ph, cc_p), lambda b, i: (b, i, 0, 0)),  # halo hi
            pl.BlockSpec((None, 2, cc_p), lambda b, i: (b, 0, 0)),            # [s1; t1]
            pl.BlockSpec((K + 2, cc_p), lambda b, i: (0, 0)),                 # [wd; bd; a2]
        ],
        out_specs=[
            pl.BlockSpec((None, t_tile, cc_p), lambda b, i: (b, i, 0)),       # z
            pl.BlockSpec((None, 1, cc_p), lambda b, i: (b, 0, 0)),            # gLN2 sum
            pl.BlockSpec((None, 1, cc_p), lambda b, i: (b, 0, 0)),            # gLN2 sumsq
        ],
        out_shape=[
            jax.ShapeDtypeStruct((B, t_pad, cc_p), cdtype),
            jax.ShapeDtypeStruct((B, 1, cc_p), f32),
            jax.ShapeDtypeStruct((B, 1, cc_p), f32),
        ],
        scratch_shapes=[pltpu.VMEM((t_ext, cc_p), f32)],
        compiler_params=pltpu.CompilerParams(
            dimension_semantics=("parallel", "arbitrary"),
            vmem_limit_bytes=_vmem_limit(est2)),
    )(y_p, halo_lo, halo_hi, st1, dwp)

    # fold gLN2: scale applied in-kernel, shift folded into the sconv bias here
    sum2 = jnp.sum(s2a, axis=(1, 2))
    sq2 = jnp.sum(q2a, axis=(1, 2))
    mean2 = sum2 / n_elem
    var2 = jnp.maximum(sq2 / n_elem - mean2 * mean2, 0.0)
    inv2 = jax.lax.rsqrt(var2 + EPS)
    s2 = g2_p[None, :] * inv2[:, None]                        # (B, Cc_p)
    t2 = be2_p[None, :] - mean2[:, None] * s2
    s2_arr = s2[:, None, :]                                   # (B, 1, Cc_p)
    bsf = (t2 @ ws_pf + bs_p)[:, None, :]                     # (B, 1, Cin_p), f32

    # ------------------------------ pass 3 -----------------------------------
    est3 = 2 * (t_tile * cc_p * cb + cc_p * 4 + cc_p * cin_p * cb + cin_p * 4
                + t_tile * cin_p * 4 + t_tile * cin_p * 4) + 3 * t_tile * cc_p * 4
    out_p = pl.pallas_call(
        _make_pass3_kernel(cdtype),
        grid=(B, nt),
        in_specs=[
            pl.BlockSpec((None, t_tile, cc_p), lambda b, i: (b, i, 0)),    # z
            pl.BlockSpec((None, 1, cc_p), lambda b, i: (b, 0, 0)),         # s2 (gLN2 scale)
            pl.BlockSpec((cc_p, cin_p), lambda b, i: (0, 0)),              # Ws (shared, resident)
            pl.BlockSpec((None, 1, cin_p), lambda b, i: (b, 0, 0)),        # folded bias
            pl.BlockSpec((None, t_tile, cin_p), lambda b, i: (b, i, 0)),   # residual x (f32)
        ],
        out_specs=pl.BlockSpec((None, t_tile, cin_p), lambda b, i: (b, i, 0)),
        out_shape=jax.ShapeDtypeStruct((B, t_pad, cin_p), f32),
        compiler_params=pltpu.CompilerParams(
            dimension_semantics=("parallel", "parallel"),
            vmem_limit_bytes=_vmem_limit(est3)),
    )(z_p, s2_arr, ws_c, bsf, x_f32)

    return out_p[:, :T, :Cin]


def tcn_block_pallas(x_bct, params, *, kernel_size, dilation,
                     compute_dtype=jnp.bfloat16, t_tile=512):
    """PyTorch-layout entry point: x_bct is (B, Cin, T).

    NOTE: prefer tcn_block_pallas_time_major and keep the surrounding network
    time-major; these transposes exist only for parity with the nn.Conv1d layout.
    """
    out_btc = tcn_block_pallas_time_major(
        jnp.transpose(x_bct, (0, 2, 1)), params,
        kernel_size=kernel_size, dilation=dilation,
        compute_dtype=compute_dtype, t_tile=t_tile)
    return jnp.transpose(out_btc, (0, 2, 1))


def tcn_block_reference(x, p, *, kernel_size, dilation):
    """Pure-JAX reference mirroring the PyTorch forward on (B, Cin, T)."""
    (w1, b1, a1, g1, be1, wd, bd, a2, g2, be2, ws, bs) = p
    B, Cin, T = x.shape
    K, pad = kernel_size, dilation * (kernel_size - 1) // 2
    hi = jax.lax.Precision.HIGHEST

    def gln(v, gamma, beta):
        mean = jnp.mean(v, axis=(1, 2), keepdims=True)
        var = jnp.mean((v - mean) ** 2, axis=(1, 2), keepdims=True)
        return gamma[None, :, None] * (v - mean) / jnp.sqrt(var + EPS) + beta[None, :, None]

    def prelu(v, a):
        return jnp.where(v >= 0, v, a * v)

    y = jnp.einsum('ic,bit->bct', w1, x, precision=hi) + b1[None, :, None]
    y = gln(prelu(y, a1), g1, be1)
    yp = jnp.pad(y, ((0, 0), (0, 0), (pad, pad)))
    z = jnp.broadcast_to(bd[None, :, None], y.shape)
    for k in range(K):
        z = z + wd[k][None, :, None] * yp[:, :, k * dilation:k * dilation + T]
    z = gln(prelu(z, a2), g2, be2)
    out = jnp.einsum('co,bct->bot', ws, z, precision=hi) + bs[None, :, None]
    return out + x


if __name__ == "__main__":
    # Small shapes consistent with the module (in -> conv -> in channels).
    B, Cin, Cc, T = 2, 16, 32, 40
    kernel_size, dilation = 3, 2

    key = jax.random.PRNGKey(0)
    ks = jax.random.split(key, 11)
    w1 = 0.1 * jax.random.normal(ks[0], (Cin, Cc), jnp.float32)          # conv1x1.weight.T
    b1 = 0.1 * jax.random.normal(ks[1], (Cc,), jnp.float32)
    a1 = jnp.float32(0.25)                                               # PReLU default init
    g1 = 1.0 + 0.1 * jax.random.normal(ks[2], (Cc,), jnp.float32)
    be1 = 0.1 * jax.random.normal(ks[3], (Cc,), jnp.float32)
    wd = 0.1 * jax.random.normal(ks[4], (kernel_size, Cc), jnp.float32)  # dconv weight (K, Cc)
    bd = 0.1 * jax.random.normal(ks[5], (Cc,), jnp.float32)
    a2 = jnp.float32(0.25)
    g2 = 1.0 + 0.1 * jax.random.normal(ks[6], (Cc,), jnp.float32)
    be2 = 0.1 * jax.random.normal(ks[7], (Cc,), jnp.float32)
    ws = 0.1 * jax.random.normal(ks[8], (Cc, Cin), jnp.float32)          # sconv.weight.T
    bs = 0.1 * jax.random.normal(ks[9], (Cin,), jnp.float32)
    params = (w1, b1, a1, g1, be1, wd, bd, a2, g2, be2, ws, bs)

    x = jax.random.normal(ks[10], (B, Cin, T), jnp.float32)

    ref = tcn_block_reference(x, params, kernel_size=kernel_size, dilation=dilation)

    # f32 MXU path with forced multi-tile time grid: exercises halo'd dconv,
    # boundary masks, accumulator pattern; tight tolerance.
    run_f32 = jax.jit(lambda v: tcn_block_pallas(
        v, params, kernel_size=kernel_size, dilation=dilation,
        compute_dtype=jnp.float32, t_tile=16))
    out_f32 = jax.block_until_ready(run_f32(x))
    assert out_f32.shape == (B, Cin, T)
    assert jnp.allclose(out_f32, ref, rtol=2e-4, atol=2e-4), "f32 kernel mismatch vs reference"

    # bf16 MXU path, multi-tile grid (production config on v6e/v7x).
    run_bf16 = jax.jit(lambda v: tcn_block_pallas(
        v, params, kernel_size=kernel_size, dilation=dilation,
        compute_dtype=jnp.bfloat16, t_tile=16))
    out_bf16 = jax.block_until_ready(run_bf16(x))
    assert jnp.allclose(out_bf16, ref, rtol=5e-2, atol=5e-2), "bf16 kernel mismatch vs reference"

    # bf16 path with the default (large) time tile -> single-tile grid path.
    run_bf16_d = jax.jit(lambda v: tcn_block_pallas(
        v, params, kernel_size=kernel_size, dilation=dilation,
        compute_dtype=jnp.bfloat16))
    out_bf16_d = jax.block_until_ready(run_bf16_d(x))
    assert jnp.allclose(out_bf16_d, ref, rtol=5e-2, atol=5e-2), "bf16 (default tile) mismatch"

    print("KERNEL_OK")
</pallas_src>

<mosaic_0001>
module attributes {stable_mosaic.version = 11 : i64} {
  func.func @kernel(%arg0: i32, %arg1: i32, %arg2: memref<1x16x128xf32, #tpu.memory_space<vmem>>, %arg3: memref<1x1x2x128xf32, #tpu.memory_space<vmem>>, %arg4: memref<1x1x2x128xf32, #tpu.memory_space<vmem>>, %arg5: memref<1x2x128xf32, #tpu.memory_space<vmem>>, %arg6: memref<5x128xf32, #tpu.memory_space<vmem>>, %arg7: memref<1x16x128xf32, #tpu.memory_space<vmem>>, %arg8: memref<1x1x128xf32, #tpu.memory_space<vmem>>, %arg9: memref<1x1x128xf32, #tpu.memory_space<vmem>>, %arg10: memref<32x128xf32, #tpu.memory_space<vmem>>) attributes {dimension_semantics = [#tpu.dimension_semantics<parallel>, #tpu.dimension_semantics<arbitrary>], iteration_bounds = array<i64: 2, 3>, scalar_prefetch = 0 : i64, scratch_operands = 1 : i64, tpu.core_type = #tpu.core_type<tc>, window_params = [{transform_indices = @transform_0, window_bounds = array<i64: 1, 16, 128>}, {transform_indices = @transform_1, window_bounds = array<i64: 1, 1, 2, 128>}, {transform_indices = @transform_2, window_bounds = array<i64: 1, 1, 2, 128>}, {transform_indices = @transform_3, window_bounds = array<i64: 1, 2, 128>}, {pipeline_mode = #tpu.pipeline_mode<synchronous>, transform_indices = @transform_4, window_bounds = array<i64: 5, 128>}, {transform_indices = @transform_5, window_bounds = array<i64: 1, 16, 128>}, {transform_indices = @transform_6, window_bounds = array<i64: 1, 1, 128>}, {transform_indices = @transform_7, window_bounds = array<i64: 1, 1, 128>}]} {
    %c0_i32 = arith.constant 0 : i32
    %0 = arith.cmpi eq, %arg1, %c0_i32 : i32
    %1 = arith.extui %0 : i1 to i32
    %c0_i32_0 = arith.constant 0 : i32
    %2 = arith.cmpi ne, %1, %c0_i32_0 : i32
    scf.if %2 {
      %cst_58 = arith.constant 0.000000e+00 : f32
      %105 = vector.broadcast %cst_58 : f32 to vector<1x128xf32>
      %c0_59 = arith.constant 0 : index
      %c0_60 = arith.constant 0 : index
      %c0_61 = arith.constant 0 : index
      %106 = vector.load %arg8[%c0_59, %c0_60, %c0_61] : memref<1x1x128xf32, #tpu.memory_space<vmem>>, vector<1x1x128xf32>
      %107 = vector.shape_cast %106 : vector<1x1x128xf32> to vector<1x128xf32>
      %108 = vector.shape_cast %105 : vector<1x128xf32> to vector<1x1x128xf32>
      tpu.vector_store %arg8[%c0_59, %c0_60, %c0_61], %108 {strides = array<i32>} : memref<1x1x128xf32, #tpu.memory_space<vmem>>, vector<1x1x128xf32>,
      %cst_62 = arith.constant 0.000000e+00 : f32
      %109 = vector.broadcast %cst_62 : f32 to vector<1x128xf32>
      %c0_63 = arith.constant 0 : index
      %c0_64 = arith.constant 0 : index
      %c0_65 = arith.constant 0 : index
      %110 = vector.load %arg9[%c0_63, %c0_64, %c0_65] : memref<1x1x128xf32, #tpu.memory_space<vmem>>, vector<1x1x128xf32>
      %111 = vector.shape_cast %110 : vector<1x1x128xf32> to vector<1x128xf32>
      %112 = vector.shape_cast %109 : vector<1x128xf32> to vector<1x1x128xf32>
      tpu.vector_store %arg9[%c0_63, %c0_64, %c0_65], %112 {strides = array<i32>} : memref<1x1x128xf32, #tpu.memory_space<vmem>>, vector<1x1x128xf32>,
    } else {
    }
    %c0 = arith.constant 0 : index
    %c0_1 = arith.constant 0 : index
    %c0_2 = arith.constant 0 : index
    %3 = vector.load %arg5[%c0, %c0_1, %c0_2] : memref<1x2x128xf32, #tpu.memory_space<vmem>>, vector<1x1x128xf32>
    %4 = vector.shape_cast %3 : vector<1x1x128xf32> to vector<1x128xf32>
    %c0_3 = arith.constant 0 : index
    %c1 = arith.constant 1 : index
    %c0_4 = arith.constant 0 : index
    %5 = vector.load %arg5[%c0_3, %c1, %c0_4] : memref<1x2x128xf32, #tpu.memory_space<vmem>>, vector<1x1x128xf32>
    %6 = vector.shape_cast %5 : vector<1x1x128xf32> to vector<1x128xf32>
    %c0_5 = arith.constant 0 : index
    %c0_6 = arith.constant 0 : index
    %c0_7 = arith.constant 0 : index
    %7 = vector.load %arg2[%c0_5, %c0_6, %c0_7] : memref<1x16x128xf32, #tpu.memory_space<vmem>>, vector<1x16x128xf32>
    %8 = vector.shape_cast %7 : vector<1x16x128xf32> to vector<16x128xf32>
    %9 = vector.broadcast %4 : vector<1x128xf32> to vector<16x128xf32>
    %10 = arith.mulf %8, %9 : vector<16x128xf32>
    %11 = vector.broadcast %6 : vector<1x128xf32> to vector<16x128xf32>
    %12 = arith.addf %10, %11 : vector<16x128xf32>
    %c16_i32 = arith.constant 16 : i32
    %13 = arith.muli %arg1, %c16_i32 : i32
    %14 = tpu.iota {dimensions = array<i32: 0>} : vector<16x128xi32>
    %15 = vector.broadcast %13 : i32 to vector<16x128xi32>
    %16 = arith.addi %15, %14 : vector<16x128xi32>
    %c40_i32 = arith.constant 40 : i32
    %17 = vector.broadcast %c40_i32 : i32 to vector<16x128xi32>
    %18 = arith.cmpi slt, %16, %17 : vector<16x128xi32>
    %cst = arith.constant 0.000000e+00 : f32
    %19 = vector.broadcast %cst : f32 to vector<16x128xf32>
    %20 = arith.select %18, %12, %19 : vector<16x128xi1>, vector<16x128xf32>
    %c0_8 = arith.constant 0 : index
    %c0_9 = arith.constant 0 : index
    %c0_10 = arith.constant 0 : index
    %c0_11 = arith.constant 0 : index
    %21 = vector.load %arg3[%c0_8, %c0_9, %c0_10, %c0_11] : memref<1x1x2x128xf32, #tpu.memory_space<vmem>>, vector<1x1x2x128xf32>
    %22 = vector.shape_cast %21 : vector<1x1x2x128xf32> to vector<2x128xf32>
    %23 = vector.broadcast %4 : vector<1x128xf32> to vector<2x128xf32>
    %24 = arith.mulf %22, %23 : vector<2x128xf32>
    %25 = vector.broadcast %6 : vector<1x128xf32> to vector<2x128xf32>
    %26 = arith.addf %24, %25 : vector<2x128xf32>
    %c16_i32_12 = arith.constant 16 : i32
    %27 = arith.muli %arg1, %c16_i32_12 : i32
    %c2_i32 = arith.constant 2 : i32
    %28 = arith.subi %27, %c2_i32 : i32
    %29 = tpu.iota {dimensions = array<i32: 0>} : vector<2x128xi32>
    %30 = vector.broadcast %28 : i32 to vector<2x128xi32>
    %31 = arith.addi %30, %29 : vector<2x128xi32>
    %c0_i32_13 = arith.constant 0 : i32
    %32 = vector.broadcast %c0_i32_13 : i32 to vector<2x128xi32>
    %33 = arith.cmpi sge, %31, %32 : vector<2x128xi32>
    %cst_14 = arith.constant 0.000000e+00 : f32
    %34 = vector.broadcast %cst_14 : f32 to vector<2x128xf32>
    %35 = arith.select %33, %26, %34 : vector<2x128xi1>, vector<2x128xf32>
    %c0_15 = arith.constant 0 : index
    %c0_16 = arith.constant 0 : index
    %c0_17 = arith.constant 0 : index
    %c0_18 = arith.constant 0 : index
    %36 = vector.load %arg4[%c0_15, %c0_16, %c0_17, %c0_18] : memref<1x1x2x128xf32, #tpu.memory_space<vmem>>, vector<1x1x2x128xf32>
    %37 = vector.shape_cast %36 : vector<1x1x2x128xf32> to vector<2x128xf32>
    %38 = vector.broadcast %4 : vector<1x128xf32> to vector<2x128xf32>
    %39 = arith.mulf %37, %38 : vector<2x128xf32>
    %40 = vector.broadcast %6 : vector<1x128xf32> to vector<2x128xf32>
    %41 = arith.addf %39, %40 : vector<2x128xf32>
    %c1_i32 = arith.constant 1 : i32
    %42 = arith.addi %arg1, %c1_i32 : i32
    %c16_i32_19 = arith.constant 16 : i32
    %43 = arith.muli %42, %c16_i32_19 : i32
    %44 = tpu.iota {dimensions = array<i32: 0>} : vector<2x128xi32>
    %45 = vector.broadcast %43 : i32 to vector<2x128xi32>
    %46 = arith.addi %45, %44 : vector<2x128xi32>
    %c40_i32_20 = arith.constant 40 : i32
    %47 = vector.broadcast %c40_i32_20 : i32 to vector<2x128xi32>
    %48 = arith.cmpi slt, %46, %47 : vector<2x128xi32>
    %cst_21 = arith.constant 0.000000e+00 : f32
    %49 = vector.broadcast %cst_21 : f32 to vector<2x128xf32>
    %50 = arith.select %48, %41, %49 : vector<2x128xi1>, vector<2x128xf32>
    %c6 = arith.constant 6 : index
    %c0_22 = arith.constant 0 : index
    %51 = vector.load %arg10[%c6, %c0_22] : memref<32x128xf32, #tpu.memory_space<vmem>>, vector<2x128xf32>
    tpu.vector_store %arg10[%c6, %c0_22], %35 {strides = array<i32>} : memref<32x128xf32, #tpu.memory_space<vmem>>, vector<2x128xf32>,
    %c8 = arith.constant 8 : index
    %c0_23 = arith.constant 0 : index
    %52 = vector.load %arg10[%c8, %c0_23] : memref<32x128xf32, #tpu.memory_space<vmem>>, vector<16x128xf32>
    tpu.vector_store %arg10[%c8, %c0_23], %20 {strides = array<i32>} : memref<32x128xf32, #tpu.memory_space<vmem>>, vector<16x128xf32>,
    %c24 = arith.constant 24 : index
    %c0_24 = arith.constant 0 : index
    %53 = vector.load %arg10[%c24, %c0_24] : memref<32x128xf32, #tpu.memory_space<vmem>>, vector<2x128xf32>
    tpu.vector_store %arg10[%c24, %c0_24], %50 {strides = array<i32>} : memref<32x128xf32, #tpu.memory_space<vmem>>, vector<2x128xf32>,
    %c6_25 = arith.constant 6 : index
    %c0_26 = arith.constant 0 : index
    %54 = vector.load %arg10[%c6_25, %c0_26] : memref<32x128xf32, #tpu.memory_space<vmem>>, vector<16x128xf32>
    %c0_27 = arith.constant 0 : index
    %c0_28 = arith.constant 0 : index
    %55 = vector.load %arg6[%c0_27, %c0_28] : memref<5x128xf32, #tpu.memory_space<vmem>>, vector<1x128xf32>
    %56 = vector.broadcast %55 : vector<1x128xf32> to vector<16x128xf32>
    %57 = arith.mulf %54, %56 : vector<16x128xf32>
    %c8_29 = arith.constant 8 : index
    %c0_30 = arith.constant 0 : index
    %58 = vector.load %arg10[%c8_29, %c0_30] : memref<32x128xf32, #tpu.memory_space<vmem>>, vector<16x128xf32>
    %c1_31 = arith.constant 1 : index
    %c0_32 = arith.constant 0 : index
    %59 = vector.load %arg6[%c1_31, %c0_32] : memref<5x128xf32, #tpu.memory_space<vmem>>, vector<1x128xf32>
    %60 = vector.broadcast %59 : vector<1x128xf32> to vector<16x128xf32>
    %61 = arith.mulf %58, %60 : vector<16x128xf32>
    %62 = arith.addf %57, %61 : vector<16x128xf32>
    %c10 = arith.constant 10 : index
    %c0_33 = arith.constant 0 : index
    %63 = vector.load %arg10[%c10, %c0_33] : memref<32x128xf32, #tpu.memory_space<vmem>>, vector<16x128xf32>
    %c2 = arith.constant 2 : index
    %c0_34 = arith.constant 0 : index
    %64 = vector.load %arg6[%c2, %c0_34] : memref<5x128xf32, #tpu.memory_space<vmem>>, vector<1x128xf32>
    %65 = vector.broadcast %64 : vector<1x128xf32> to vector<16x128xf32>
    %66 = arith.mulf %63, %65 : vector<16x128xf32>
    %67 = arith.addf %62, %66 : vector<16x128xf32>
    %c3 = arith.constant 3 : index
    %c0_35 = arith.constant 0 : index
    %68 = vector.load %arg6[%c3, %c0_35] : memref<5x128xf32, #tpu.memory_space<vmem>>, vector<1x128xf32>
    %69 = vector.broadcast %68 : vector<1x128xf32> to vector<16x128xf32>
    %70 = arith.addf %67, %69 : vector<16x128xf32>
    %cst_36 = arith.constant 0.000000e+00 : f32
    %71 = vector.broadcast %cst_36 : f32 to vector<16x128xf32>
    %72 = arith.cmpf oge, %70, %71 : vector<16x128xf32>
    %c4 = arith.constant 4 : index
    %c0_37 = arith.constant 0 : index
    %73 = vector.load %arg6[%c4, %c0_37] : memref<5x128xf32, #tpu.memory_space<vmem>>, vector<1x128xf32>
    %74 = vector.broadcast %73 : vector<1x128xf32> to vector<16x128xf32>
    %75 = arith.mulf %74, %70 : vector<16x128xf32>
    %76 = arith.select %72, %70, %75 : vector<16x128xi1>, vector<16x128xf32>
    %c16_i32_38 = arith.constant 16 : i32
    %77 = arith.muli %arg1, %c16_i32_38 : i32
    %78 = tpu.iota {dimensions = array<i32: 0>} : vector<16x128xi32>
    %79 = vector.broadcast %77 : i32 to vector<16x128xi32>
    %80 = arith.addi %79, %78 : vector<16x128xi32>
    %c40_i32_39 = arith.constant 40 : i32
    %81 = vector.broadcast %c40_i32_39 : i32 to vector<16x128xi32>
    %82 = arith.cmpi slt, %80, %81 : vector<16x128xi32>
    %cst_40 = arith.constant 0.000000e+00 : f32
    %83 = vector.broadcast %cst_40 : f32 to vector<16x128xf32>
    %84 = arith.select %82, %76, %83 : vector<16x128xi1>, vector<16x128xf32>
    %c0_41 = arith.constant 0 : index
    %c0_42 = arith.constant 0 : index
    %c0_43 = arith.constant 0 : index
    %85 = vector.load %arg8[%c0_41, %c0_42, %c0_43] : memref<1x1x128xf32, #tpu.memory_space<vmem>>, vector<1x1x128xf32>
    %86 = vector.shape_cast %85 : vector<1x1x128xf32> to vector<1x128xf32>
    %cst_44 = arith.constant dense<0.000000e+00> : vector<128xf32>
    %87 = vector.multi_reduction <add>, %84, %cst_44 [0] : vector<16x128xf32> to vector<128xf32>
    %88 = vector.shape_cast %87 : vector<128xf32> to vector<1x128xf32>
    %89 = arith.addf %86, %88 : vector<1x128xf32>
    %c0_45 = arith.constant 0 : index
    %c0_46 = arith.constant 0 : index
    %c0_47 = arith.constant 0 : index
    %90 = vector.load %arg8[%c0_45, %c0_46, %c0_47] : memref<1x1x128xf32, #tpu.memory_space<vmem>>, vector<1x1x128xf32>
    %91 = vector.shape_cast %90 : vector<1x1x128xf32> to vector<1x128xf32>
    %92 = vector.shape_cast %89 : vector<1x128xf32> to vector<1x1x128xf32>
    tpu.vector_store %arg8[%c0_45, %c0_46, %c0_47], %92 {strides = array<i32>} : memref<1x1x128xf32, #tpu.memory_space<vmem>>, vector<1x1x128xf32>,
    %c0_48 = arith.constant 0 : index
    %c0_49 = arith.constant 0 : index
    %c0_50 = arith.constant 0 : index
    %93 = vector.load %arg9[%c0_48, %c0_49, %c0_50] : memref<1x1x128xf32, #tpu.memory_space<vmem>>, vector<1x1x128xf32>
    %94 = vector.shape_cast %93 : vector<1x1x128xf32> to vector<1x128xf32>
    %95 = arith.mulf %84, %84 : vector<16x128xf32>
    %cst_51 = arith.constant dense<0.000000e+00> : vector<128xf32>
    %96 = vector.multi_reduction <add>, %95, %cst_51 [0] : vector<16x128xf32> to vector<128xf32>
    %97 = vector.shape_cast %96 : vector<128xf32> to vector<1x128xf32>
    %98 = arith.addf %94, %97 : vector<1x128xf32>
    %c0_52 = arith.constant 0 : index
    %c0_53 = arith.constant 0 : index
    %c0_54 = arith.constant 0 : index
    %99 = vector.load %arg9[%c0_52, %c0_53, %c0_54] : memref<1x1x128xf32, #tpu.memory_space<vmem>>, vector<1x1x128xf32>
    %100 = vector.shape_cast %99 : vector<1x1x128xf32> to vector<1x128xf32>
    %101 = vector.shape_cast %98 : vector<1x128xf32> to vector<1x1x128xf32>
    tpu.vector_store %arg9[%c0_52, %c0_53, %c0_54], %101 {strides = array<i32>} : memref<1x1x128xf32, #tpu.memory_space<vmem>>, vector<1x1x128xf32>,
    %c0_55 = arith.constant 0 : index
    %c0_56 = arith.constant 0 : index
    %c0_57 = arith.constant 0 : index
    %102 = vector.load %arg7[%c0_55, %c0_56, %c0_57] : memref<1x16x128xf32, #tpu.memory_space<vmem>>, vector<1x16x128xf32>
    %103 = vector.shape_cast %102 : vector<1x16x128xf32> to vector<16x128xf32>
    %104 = vector.shape_cast %84 : vector<16x128xf32> to vector<1x16x128xf32>
    tpu.vector_store %arg7[%c0_55, %c0_56, %c0_57], %104 {strides = array<i32>} : memref<1x16x128xf32, #tpu.memory_space<vmem>>, vector<1x16x128xf32>,
    return
  }
  func.func @transform_0(%arg0: i32, %arg1: i32) -> (i32, i32, i32) {
    %c0_i32 = arith.constant 0 : i32
    %c0_i32_0 = arith.constant 0 : i32
    return %arg0, %arg1, %c0_i32 : i32, i32, i32
  }
  func.func @transform_1(%arg0: i32, %arg1: i32) -> (i32, i32, i32, i32) {
    %c0_i32 = arith.constant 0 : i32
    %c0_i32_0 = arith.constant 0 : i32
    %c0_i32_1 = arith.constant 0 : i32
    return %arg0, %arg1, %c0_i32, %c0_i32_0 : i32, i32, i32, i32
  }
  func.func @transform_2(%arg0: i32, %arg1: i32) -> (i32, i32, i32, i32) {
    %c0_i32 = arith.constant 0 : i32
    %c0_i32_0 = arith.constant 0 : i32
    %c0_i32_1 = arith.constant 0 : i32
    return %arg0, %arg1, %c0_i32, %c0_i32_0 : i32, i32, i32, i32
  }
  func.func @transform_3(%arg0: i32, %arg1: i32) -> (i32, i32, i32) {
    %c0_i32 = arith.constant 0 : i32
    %c0_i32_0 = arith.constant 0 : i32
    %c0_i32_1 = arith.constant 0 : i32
    return %arg0, %c0_i32, %c0_i32_0 : i32, i32, i32
  }
  func.func @transform_4(%arg0: i32, %arg1: i32) -> (i32, i32) {
    %c0_i32 = arith.constant 0 : i32
    %c0_i32_0 = arith.constant 0 : i32
    %c0_i32_1 = arith.constant 0 : i32
    return %c0_i32, %c0_i32_0 : i32, i32
  }
  func.func @transform_5(%arg0: i32, %arg1: i32) -> (i32, i32, i32) {
    %c0_i32 = arith.constant 0 : i32
    %c0_i32_0 = arith.constant 0 : i32
    return %arg0, %arg1, %c0_i32 : i32, i32, i32
  }
  func.func @transform_6(%arg0: i32, %arg1: i32) -> (i32, i32, i32) {
    %c0_i32 = arith.constant 0 : i32
    %c0_i32_0 = arith.constant 0 : i32
    %c0_i32_1 = arith.constant 0 : i32
    return %arg0, %c0_i32, %c0_i32_0 : i32, i32, i32
  }
  func.func @transform_7(%arg0: i32, %arg1: i32) -> (i32, i32, i32) {
    %c0_i32 = arith.constant 0 : i32
    %c0_i32_0 = arith.constant 0 : i32
    %c0_i32_1 = arith.constant 0 : i32
    return %arg0, %c0_i32, %c0_i32_0 : i32, i32, i32
  }
}

module attributes {stable_mosaic.version = 11 : i64} {
  func.func @kernel(%arg0: i32, %arg1: i32, %arg2: memref<1x16x128xf32, #tpu.memory_space<vmem>>, %arg3: memref<128x128xf32, #tpu.memory_space<vmem>>, %arg4: memref<2x128xf32, #tpu.memory_space<vmem>>, %arg5: memref<1x16x128xf32, #tpu.memory_space<vmem>>, %arg6: memref<1x1x128xf32, #tpu.memory_space<vmem>>, %arg7: memref<1x1x128xf32, #tpu.memory_space<vmem>>) attributes {dimension_semantics = [#tpu.dimension_semantics<parallel>, #tpu.dimension_semantics<arbitrary>], iteration_bounds = array<i64: 2, 3>, scalar_prefetch = 0 : i64, scratch_operands = 0 : i64, tpu.core_type = #tpu.core_type<tc>, window_params = [{transform_indices = @transform_0, window_bounds = array<i64: 1, 16, 128>}, {pipeline_mode = #tpu.pipeline_mode<synchronous>, transform_indices = @transform_1, window_bounds = array<i64: 128, 128>}, {pipeline_mode = #tpu.pipeline_mode<synchronous>, transform_indices = @transform_2, window_bounds = array<i64: 2, 128>}, {transform_indices = @transform_3, window_bounds = array<i64: 1, 16, 128>}, {transform_indices = @transform_4, window_bounds = array<i64: 1, 1, 128>}, {transform_indices = @transform_5, window_bounds = array<i64: 1, 1, 128>}]} {
    %c0_i32 = arith.constant 0 : i32
    %0 = arith.cmpi eq, %arg1, %c0_i32 : i32
    %1 = arith.extui %0 : i1 to i32
    %c0_i32_0 = arith.constant 0 : i32
    %2 = arith.cmpi ne, %1, %c0_i32_0 : i32
    scf.if %2 {
      %cst_27 = arith.constant 0.000000e+00 : f32
      %44 = vector.broadcast %cst_27 : f32 to vector<1x128xf32>
      %c0_28 = arith.constant 0 : index
      %c0_29 = arith.constant 0 : index
      %c0_30 = arith.constant 0 : index
      %45 = vector.load %arg6[%c0_28, %c0_29, %c0_30] : memref<1x1x128xf32, #tpu.memory_space<vmem>>, vector<1x1x128xf32>
      %46 = vector.shape_cast %45 : vector<1x1x128xf32> to vector<1x128xf32>
      %47 = vector.shape_cast %44 : vector<1x128xf32> to vector<1x1x128xf32>
      tpu.vector_store %arg6[%c0_28, %c0_29, %c0_30], %47 {strides = array<i32>} : memref<1x1x128xf32, #tpu.memory_space<vmem>>, vector<1x1x128xf32>,
      %cst_31 = arith.constant 0.000000e+00 : f32
      %48 = vector.broadcast %cst_31 : f32 to vector<1x128xf32>
      %c0_32 = arith.constant 0 : index
      %c0_33 = arith.constant 0 : index
      %c0_34 = arith.constant 0 : index
      %49 = vector.load %arg7[%c0_32, %c0_33, %c0_34] : memref<1x1x128xf32, #tpu.memory_space<vmem>>, vector<1x1x128xf32>
      %50 = vector.shape_cast %49 : vector<1x1x128xf32> to vector<1x128xf32>
      %51 = vector.shape_cast %48 : vector<1x128xf32> to vector<1x1x128xf32>
      tpu.vector_store %arg7[%c0_32, %c0_33, %c0_34], %51 {strides = array<i32>} : memref<1x1x128xf32, #tpu.memory_space<vmem>>, vector<1x1x128xf32>,
    } else {
    }
    %c0 = arith.constant 0 : index
    %c0_1 = arith.constant 0 : index
    %c0_2 = arith.constant 0 : index
    %3 = vector.load %arg2[%c0, %c0_1, %c0_2] : memref<1x16x128xf32, #tpu.memory_space<vmem>>, vector<1x16x128xf32>
    %4 = vector.shape_cast %3 : vector<1x16x128xf32> to vector<16x128xf32>
    %c0_3 = arith.constant 0 : index
    %c0_4 = arith.constant 0 : index
    %5 = vector.load %arg3[%c0_3, %c0_4] : memref<128x128xf32, #tpu.memory_space<vmem>>, vector<128x128xf32>
    %cst = arith.constant dense<0.000000e+00> : vector<16x128xf32>
    %6 = tpu.matmul %4, %5, %cst {dimension_numbers = #tpu.dot_dimension_numbers<[1], [0], [0], [1], [0, 0, 1, 1], [], []>} : vector<16x128xf32>, vector<128x128xf32>, vector<16x128xf32> -> vector<16x128xf32>
    %c0_5 = arith.constant 0 : index
    %c0_6 = arith.constant 0 : index
    %7 = vector.load %arg4[%c0_5, %c0_6] : memref<2x128xf32, #tpu.memory_space<vmem>>, vector<1x128xf32>
    %8 = vector.broadcast %7 : vector<1x128xf32> to vector<16x128xf32>
    %9 = arith.addf %6, %8 : vector<16x128xf32>
    %cst_7 = arith.constant 0.000000e+00 : f32
    %10 = vector.broadcast %cst_7 : f32 to vector<16x128xf32>
    %11 = arith.cmpf oge, %9, %10 : vector<16x128xf32>
    %c1 = arith.constant 1 : index
    %c0_8 = arith.constant 0 : index
    %12 = vector.load %arg4[%c1, %c0_8] : memref<2x128xf32, #tpu.memory_space<vmem>>, vector<1x128xf32>
    %13 = vector.broadcast %12 : vector<1x128xf32> to vector<16x128xf32>
    %14 = arith.mulf %13, %9 : vector<16x128xf32>
    %15 = arith.select %11, %9, %14 : vector<16x128xi1>, vector<16x128xf32>
    %c16_i32 = arith.constant 16 : i32
    %16 = arith.muli %arg1, %c16_i32 : i32
    %17 = tpu.iota {dimensions = array<i32: 0>} : vector<16x128xi32>
    %18 = vector.broadcast %16 : i32 to vector<16x128xi32>
    %19 = arith.addi %18, %17 : vector<16x128xi32>
    %c40_i32 = arith.constant 40 : i32
    %20 = vector.broadcast %c40_i32 : i32 to vector<16x128xi32>
    %21 = arith.cmpi slt, %19, %20 : vector<16x128xi32>
    %cst_9 = arith.constant 0.000000e+00 : f32
    %22 = vector.broadcast %cst_9 : f32 to vector<16x128xf32>
    %23 = arith.select %21, %15, %22 : vector<16x128xi1>, vector<16x128xf32>
    %c0_10 = arith.constant 0 : index
    %c0_11 = arith.constant 0 : index
    %c0_12 = arith.constant 0 : index
    %24 = vector.load %arg6[%c0_10, %c0_11, %c0_12] : memref<1x1x128xf32, #tpu.memory_space<vmem>>, vector<1x1x128xf32>
    %25 = vector.shape_cast %24 : vector<1x1x128xf32> to vector<1x128xf32>
    %cst_13 = arith.constant dense<0.000000e+00> : vector<128xf32>
    %26 = vector.multi_reduction <add>, %23, %cst_13 [0] : vector<16x128xf32> to vector<128xf32>
    %27 = vector.shape_cast %26 : vector<128xf32> to vector<1x128xf32>
    %28 = arith.addf %25, %27 : vector<1x128xf32>
    %c0_14 = arith.constant 0 : index
    %c0_15 = arith.constant 0 : index
    %c0_16 = arith.constant 0 : index
    %29 = vector.load %arg6[%c0_14, %c0_15, %c0_16] : memref<1x1x128xf32, #tpu.memory_space<vmem>>, vector<1x1x128xf32>
    %30 = vector.shape_cast %29 : vector<1x1x128xf32> to vector<1x128xf32>
    %31 = vector.shape_cast %28 : vector<1x128xf32> to vector<1x1x128xf32>
    tpu.vector_store %arg6[%c0_14, %c0_15, %c0_16], %31 {strides = array<i32>} : memref<1x1x128xf32, #tpu.memory_space<vmem>>, vector<1x1x128xf32>,
    %c0_17 = arith.constant 0 : index
    %c0_18 = arith.constant 0 : index
    %c0_19 = arith.constant 0 : index
    %32 = vector.load %arg7[%c0_17, %c0_18, %c0_19] : memref<1x1x128xf32, #tpu.memory_space<vmem>>, vector<1x1x128xf32>
    %33 = vector.shape_cast %32 : vector<1x1x128xf32> to vector<1x128xf32>
    %34 = arith.mulf %23, %23 : vector<16x128xf32>
    %cst_20 = arith.constant dense<0.000000e+00> : vector<128xf32>
    %35 = vector.multi_reduction <add>, %34, %cst_20 [0] : vector<16x128xf32> to vector<128xf32>
    %36 = vector.shape_cast %35 : vector<128xf32> to vector<1x128xf32>
    %37 = arith.addf %33, %36 : vector<1x128xf32>
    %c0_21 = arith.constant 0 : index
    %c0_22 = arith.constant 0 : index
    %c0_23 = arith.constant 0 : index
    %38 = vector.load %arg7[%c0_21, %c0_22, %c0_23] : memref<1x1x128xf32, #tpu.memory_space<vmem>>, vector<1x1x128xf32>
    %39 = vector.shape_cast %38 : vector<1x1x128xf32> to vector<1x128xf32>
    %40 = vector.shape_cast %37 : vector<1x128xf32> to vector<1x1x128xf32>
    tpu.vector_store %arg7[%c0_21, %c0_22, %c0_23], %40 {strides = array<i32>} : memref<1x1x128xf32, #tpu.memory_space<vmem>>, vector<1x1x128xf32>,
    %c0_24 = arith.constant 0 : index
    %c0_25 = arith.constant 0 : index
    %c0_26 = arith.constant 0 : index
    %41 = vector.load %arg5[%c0_24, %c0_25, %c0_26] : memref<1x16x128xf32, #tpu.memory_space<vmem>>, vector<1x16x128xf32>
    %42 = vector.shape_cast %41 : vector<1x16x128xf32> to vector<16x128xf32>
    %43 = vector.shape_cast %23 : vector<16x128xf32> to vector<1x16x128xf32>
    tpu.vector_store %arg5[%c0_24, %c0_25, %c0_26], %43 {strides = array<i32>} : memref<1x16x128xf32, #tpu.memory_space<vmem>>, vector<1x16x128xf32>,
    return
  }
  func.func @transform_0(%arg0: i32, %arg1: i32) -> (i32, i32, i32) {
    %c0_i32 = arith.constant 0 : i32
    %c0_i32_0 = arith.constant 0 : i32
    return %arg0, %arg1, %c0_i32 : i32, i32, i32
  }
  func.func @transform_1(%arg0: i32, %arg1: i32) -> (i32, i32) {
    %c0_i32 = arith.constant 0 : i32
    %c0_i32_0 = arith.constant 0 : i32
    %c0_i32_1 = arith.constant 0 : i32
    return %c0_i32, %c0_i32_0 : i32, i32
  }
  func.func @transform_2(%arg0: i32, %arg1: i32) -> (i32, i32) {
    %c0_i32 = arith.constant 0 : i32
    %c0_i32_0 = arith.constant 0 : i32
    %c0_i32_1 = arith.constant 0 : i32
    return %c0_i32, %c0_i32_0 : i32, i32
  }
  func.func @transform_3(%arg0: i32, %arg1: i32) -> (i32, i32, i32) {
    %c0_i32 = arith.constant 0 : i32
    %c0_i32_0 = arith.constant 0 : i32
    return %arg0, %arg1, %c0_i32 : i32, i32, i32
  }
  func.func @transform_4(%arg0: i32, %arg1: i32) -> (i32, i32, i32) {
    %c0_i32 = arith.constant 0 : i32
    %c0_i32_0 = arith.constant 0 : i32
    %c0_i32_1 = arith.constant 0 : i32
    return %arg0, %c0_i32, %c0_i32_0 : i32, i32, i32
  }
  func.func @transform_5(%arg0: i32, %arg1: i32) -> (i32, i32, i32) {
    %c0_i32 = arith.constant 0 : i32
    %c0_i32_0 = arith.constant 0 : i32
    %c0_i32_1 = arith.constant 0 : i32
    return %arg0, %c0_i32, %c0_i32_0 : i32, i32, i32
  }
}

module attributes {stable_mosaic.version = 11 : i64} {
  func.func @kernel(%arg0: i32, %arg1: i32, %arg2: memref<1x16x128xf32, #tpu.memory_space<vmem>>, %arg3: memref<1x1x128xf32, #tpu.memory_space<vmem>>, %arg4: memref<128x128xf32, #tpu.memory_space<vmem>>, %arg5: memref<1x1x128xf32, #tpu.memory_space<vmem>>, %arg6: memref<1x16x128xf32, #tpu.memory_space<vmem>>, %arg7: memref<1x16x128xf32, #tpu.memory_space<vmem>>) attributes {dimension_semantics = [#tpu.dimension_semantics<parallel>, #tpu.dimension_semantics<parallel>], iteration_bounds = array<i64: 2, 3>, scalar_prefetch = 0 : i64, scratch_operands = 0 : i64, tpu.core_type = #tpu.core_type<tc>, window_params = [{transform_indices = @transform_0, window_bounds = array<i64: 1, 16, 128>}, {transform_indices = @transform_1, window_bounds = array<i64: 1, 1, 128>}, {pipeline_mode = #tpu.pipeline_mode<synchronous>, transform_indices = @transform_2, window_bounds = array<i64: 128, 128>}, {transform_indices = @transform_3, window_bounds = array<i64: 1, 1, 128>}, {transform_indices = @transform_4, window_bounds = array<i64: 1, 16, 128>}, {transform_indices = @transform_5, window_bounds = array<i64: 1, 16, 128>}]} {
    %c0 = arith.constant 0 : index
    %c0_0 = arith.constant 0 : index
    %c0_1 = arith.constant 0 : index
    %0 = vector.load %arg2[%c0, %c0_0, %c0_1] : memref<1x16x128xf32, #tpu.memory_space<vmem>>, vector<1x16x128xf32>
    %1 = vector.shape_cast %0 : vector<1x16x128xf32> to vector<16x128xf32>
    %c0_2 = arith.constant 0 : index
    %c0_3 = arith.constant 0 : index
    %c0_4 = arith.constant 0 : index
    %2 = vector.load %arg3[%c0_2, %c0_3, %c0_4] : memref<1x1x128xf32, #tpu.memory_space<vmem>>, vector<1x1x128xf32>
    %3 = vector.shape_cast %2 : vector<1x1x128xf32> to vector<1x128xf32>
    %4 = vector.broadcast %3 : vector<1x128xf32> to vector<16x128xf32>
    %5 = arith.mulf %1, %4 : vector<16x128xf32>
    %c0_5 = arith.constant 0 : index
    %c0_6 = arith.constant 0 : index
    %6 = vector.load %arg4[%c0_5, %c0_6] : memref<128x128xf32, #tpu.memory_space<vmem>>, vector<128x128xf32>
    %cst = arith.constant dense<0.000000e+00> : vector<16x128xf32>
    %7 = tpu.matmul %5, %6, %cst {dimension_numbers = #tpu.dot_dimension_numbers<[1], [0], [0], [1], [0, 0, 1, 1], [], []>} : vector<16x128xf32>, vector<128x128xf32>, vector<16x128xf32> -> vector<16x128xf32>
    %c0_7 = arith.constant 0 : index
    %c0_8 = arith.constant 0 : index
    %c0_9 = arith.constant 0 : index
    %8 = vector.load %arg5[%c0_7, %c0_8, %c0_9] : memref<1x1x128xf32, #tpu.memory_space<vmem>>, vector<1x1x128xf32>
    %9 = vector.shape_cast %8 : vector<1x1x128xf32> to vector<1x128xf32>
    %10 = vector.broadcast %9 : vector<1x128xf32> to vector<16x128xf32>
    %11 = arith.addf %7, %10 : vector<16x128xf32>
    %c0_10 = arith.constant 0 : index
    %c0_11 = arith.constant 0 : index
    %c0_12 = arith.constant 0 : index
    %12 = vector.load %arg6[%c0_10, %c0_11, %c0_12] : memref<1x16x128xf32, #tpu.memory_space<vmem>>, vector<1x16x128xf32>
    %13 = vector.shape_cast %12 : vector<1x16x128xf32> to vector<16x128xf32>
    %14 = arith.addf %11, %13 : vector<16x128xf32>
    %c0_13 = arith.constant 0 : index
    %c0_14 = arith.constant 0 : index
    %c0_15 = arith.constant 0 : index
    %15 = vector.load %arg7[%c0_13, %c0_14, %c0_15] : memref<1x16x128xf32, #tpu.memory_space<vmem>>, vector<1x16x128xf32>
    %16 = vector.shape_cast %15 : vector<1x16x128xf32> to vector<16x128xf32>
    %17 = vector.shape_cast %14 : vector<16x128xf32> to vector<1x16x128xf32>
    tpu.vector_store %arg7[%c0_13, %c0_14, %c0_15], %17 {strides = array<i32>} : memref<1x16x128xf32, #tpu.memory_space<vmem>>, vector<1x16x128xf32>,
    return
  }
  func.func @transform_0(%arg0: i32, %arg1: i32) -> (i32, i32, i32) {
    %c0_i32 = arith.constant 0 : i32
    %c0_i32_0 = arith.constant 0 : i32
    return %arg0, %arg1, %c0_i32 : i32, i32, i32
  }
  func.func @transform_1(%arg0: i32, %arg1: i32) -> (i32, i32, i32) {
    %c0_i32 = arith.constant 0 : i32
    %c0_i32_0 = arith.constant 0 : i32
    %c0_i32_1 = arith.constant 0 : i32
    return %arg0, %c0_i32, %c0_i32_0 : i32, i32, i32
  }
  func.func @transform_2(%arg0: i32, %arg1: i32) -> (i32, i32) {
    %c0_i32 = arith.constant 0 : i32
    %c0_i32_0 = arith.constant 0 : i32
    %c0_i32_1 = arith.constant 0 : i32
    return %c0_i32, %c0_i32_0 : i32, i32
  }
  func.func @transform_3(%arg0: i32, %arg1: i32) -> (i32, i32, i32) {
    %c0_i32 = arith.constant 0 : i32
    %c0_i32_0 = arith.constant 0 : i32
    %c0_i32_1 = arith.constant 0 : i32
    return %arg0, %c0_i32, %c0_i32_0 : i32, i32, i32
  }
  func.func @transform_4(%arg0: i32, %arg1: i32) -> (i32, i32, i32) {
    %c0_i32 = arith.constant 0 : i32
    %c0_i32_0 = arith.constant 0 : i32
    return %arg0, %arg1, %c0_i32 : i32, i32, i32
  }
  func.func @transform_5(%arg0: i32, %arg1: i32) -> (i32, i32, i32) {
    %c0_i32 = arith.constant 0 : i32
    %c0_i32_0 = arith.constant 0 : i32
    return %arg0, %arg1, %c0_i32 : i32, i32, i32
  }
}

</mosaic_0001>

<bundles_post_ra>
// kernel: _lambda_.3
= control target key start
LH: loop header
LB: loop body
LE: loop exit
PB: predicated region body
PF: predicated region fallthrough
CT: control target
= control target key end

     0   :  { %s784_s18 = smov 0   ;;  %s786_s19 = smov 0   ;;  %s918_s0 = inlined_call_operand.vmem [shape: f32[2,48,128], index: 0, kind: input, shape index: {}]   ;;  %s919_s1 = inlined_call_operand.vmem [shape: f32[128,128], index: 1, kind: input, shape index: {}]   ;;  %s920_s2 = inlined_call_operand.vmem [shape: f32[2,128], index: 2, kind: input, shape index: {}]   ;;  %s921_s3 = inlined_call_operand.vmem [shape: f32[2,48,128], index: 3, kind: output, shape index: {0}]   ;;  %s922_s4 = inlined_call_operand.vmem [shape: f32[2,1,128], index: 4, kind: output, shape index: {1}]   ;;  %s923_s5 = inlined_call_operand.vmem [shape: f32[2,1,128], index: 5, kind: output, shape index: {2}]  }
   0x1   :  { %s788_s20 = smov 0   ;;  %s790_s21 = smov 0  }
   0x2   :  { %s792_s22 = smov 0  }
   0x3 LB: > { %s25_s23 = sadd.s32 1, %s743_s20  ;;  %s28_s24 = sadd.s32 1, %s747_s21  ;;  %s751_s22 = sphi %s792_s22, %s16_s22   ;;  %s747_s21 = sphi %s790_s21, %s927_s21   ;;  %s743_s20 = sphi %s788_s20, %s926_s20   ;;  %s739_s19 = sphi %s786_s19, %s925_s19   ;;  %s735_s18 = sphi %s784_s18, %s924_s18  }
   0x4   : > { %p26_p0 = scmp.ge.s32.totalorder %s25_s23, 3  ;;  %p575_p1 = scmp.ge.s32.totalorder %s751_s22, 1 }
   0x5   : > { %p213_p2 = scmp.lt.s32.totalorder %s751_s22, 7 }
   0x6   : > { %s929_s23 = smov (%p26_p0, %s25_s23), 0  ;;  %s931_s24 = smov (!%p26_p0, %s28_s24), %s747_s21 }
   0x7   : > { %p214_p3 = pnand %p575_p1, %p213_p2  ;;  %p30_p4 = scmp.ge.s32.totalorder %s931_s24, 2 }
   0x8   : > { %s576_s25 = sshll.u32 (!%p214_p3), %s735_s18, 1  ;;  %p256_p5 = scmp.lt.s32.totalorder (!%p214_p3), %s739_s19, 1 }
   0x9   : > { %s933_s24 = smov (%p30_p4, %s931_s24), 0  ;;  %217 = sbr.rel (%p214_p3) target bundleno = 298 (0x12a), region = 32 }
   0xa   : > { %p258_p6 = scmp.lt.s32.totalorder (!%p214_p3), %s576_s25, 5  ;;  %p580_p7 = scmp.ne.s32.totalorder (!%p214_p3), %s735_s18, 0 }
  0x10   : > { %s935_s19 = smov (!%p256_p5, %s739_s19), 1  ;;  %s937_s25 = smov (!%p258_p6, %s576_s25), 5 }
  0x11   : > { %s671_s26 = smul.u32 6, %s935_s19  ;;  %s820_s29 = scalar_lea.vmem %s922_s4, %s935_s19  ;;  %v753_v0 = vmov (!%p580_p7), 0.0  }
  0x12   : > { %s825_s7 = scalar_lea.vmem %s923_s5, %s935_s19  ;;  %284 = sbr.rel (%p580_p7) target bundleno = 25 (0x19), region = 36  ;;  %285 = vst [vmem:[%s820_s29] sm:$0x1] (!%p580_p7), %v753_v0 }
  0x13   : > { %s261_s8 = sadd.s32 %s671_s26, %s937_s25  ;;  %286 = vst [vmem:[%s825_s7] sm:$0x1] (!%p580_p7), %v753_v0 }
  0x14   : > { %s577_s9 = sshll.u32 %s261_s8, 3 }
  0x15   : > { %s830_s12 = scalar_lea.vmem %s918_s0, %s577_s9  ;;  %s835_s15 = scalar_lea.vmem %s921_s3, %s577_s9 }
  0x19 PF: > { %v289_v1 = vld [vmem:[%s919_s1] sm:$0xff]  ;;  %v290_v2 = vld [vmem:[%s919_s1 + $0x8] sm:$0xff]  ;;  %v291_v3 = vld [vmem:[%s919_s1 + $0x10] sm:$0xff]  ;;  %v397_v27 = vlaneseq  ;;  %s583_s19 = sshll.u32 %s735_s18, 4 }
  0x1a   : > { %v639_v4 = vpack.c.bf16 %v290_v2, %v289_v1  ;;  %v292_v5 = vld [vmem:[%s919_s1 + $0x18] sm:$0xff]  ;;  %v293_v7 = vld [vmem:[%s919_s1 + $0x20] sm:$0xff]  ;;  %v294_v8 = vld [vmem:[%s919_s1 + $0x28] sm:$0xff]  ;;  %v400_v30 = vstv %s583_s19 }
  0x1b   : > { %v643_v6 = vpack.c.bf16 %v292_v5, %v291_v3  ;;  %v647_v9 = vpack.c.bf16 %v294_v8, %v293_v7  ;;  %v287_v10 = vld [vmem:[%s830_s12] sm:$0xff]  ;;  %v295_v11 = vld [vmem:[%s919_s1 + $0x30] sm:$0xff]  ;;  %v296_v12 = vld [vmem:[%s919_s1 + $0x38] sm:$0xff]  ;;  %v398_v28 = vshrl.u32 %v397_v27, 7 }
  0x1c   : > { %640 = vmatprep.subr.bf16.mxu0 %v639_v4  ;;  %636 = vmatprep.mubr.f32.mxu0 %v287_v10  ;;  %v651_v13 = vpack.c.bf16 %v296_v12, %v295_v11  ;;  %v297_v14 = vld [vmem:[%s919_s1 + $0x40] sm:$0xff]  ;;  %v298_v15 = vld [vmem:[%s919_s1 + $0x48] sm:$0xff]  ;;  %v299_v17 = vld [vmem:[%s919_s1 + $0x50] sm:$0xff] }
  0x1d   : > { %642 = vmatpush3.bf16.msra.mxu0 %v639_v4  ;;  %v655_v16 = vpack.c.bf16 %v298_v15, %v297_v14  ;;  %v300_v18 = vld [vmem:[%s919_s1 + $0x58] sm:$0xff]  ;;  %v301_v20 = vld [vmem:[%s919_s1 + $0x60] sm:$0xff]  ;;  %v302_v21 = vld [vmem:[%s919_s1 + $0x68] sm:$0xff]  ;;  %v399_v29 = vadd.s32 8, %v398_v28  ;;  %v401_v35 = vadd.s32 %v400_v30, %v398_v28 }
  0x1e   : > { %644 = vmatprep.subr.bf16.mxu0 %v643_v6  ;;  %v659_v19 = vpack.c.bf16 %v300_v18, %v299_v17  ;;  %v663_v22 = vpack.c.bf16 %v302_v21, %v301_v20  ;;  %v303_v23 = vld [vmem:[%s919_s1 + $0x70] sm:$0xff]  ;;  %v304_v24 = vld [vmem:[%s919_s1 + $0x78] sm:$0xff]  ;;  %v288_v26 = vld [vmem:[%s830_s12 + $0x8] sm:$0xff] }
  0x1f   : > { %v667_v25 = vpack.c.bf16 %v304_v24, %v303_v23  ;;  %v581_v31 = vld [vmem:[%s920_s2] ss:$0 sm:$0xff]  ;;  %v402_v32 = vadd.s32 %v400_v30, %v399_v29  ;;  %v582_v34 = vld [vmem:[%s920_s2 + $0x1] ss:$0 sm:$0xff]  ;;  %vm403_vm3 = vcmp.lt.s32.totalorder %v401_v35, 40 }
  0x20   : > { %v407_v58 = vld [vmem:[%s820_s29] sm:$0x1] }
  0x21   : > { %646 = vmatpush3.bf16.msra.mxu0 %v643_v6  ;;  %vm404_vm1 = vcmp.lt.s32.totalorder %v402_v32, 40  ;;  %v417_v61 = vld [vmem:[%s825_s7] sm:$0x1] }
  0x22   : > { %648 = vmatprep.subr.bf16.mxu0 %v647_v9 }
  0x25   : > { %650 = vmatpush3.bf16.msra.mxu0 %v647_v9 }
  0x26   : > { %652 = vmatprep.subr.bf16.mxu0 %v651_v13 }
  0x29   : > { %654 = vmatpush3.bf16.msra.mxu0 %v651_v13 }
  0x2a   : > { %656 = vmatprep.subr.bf16.mxu0 %v655_v16 }
  0x2d   : > { %658 = vmatpush3.bf16.msra.mxu0 %v655_v16 }
  0x2e   : > { %660 = vmatprep.subr.bf16.mxu0 %v659_v19 }
  0x31   : > { %662 = vmatpush3.bf16.msra.mxu0 %v659_v19 }
  0x32   : > { %664 = vmatprep.subr.bf16.mxu0 %v663_v22 }
  0x35   : > { %666 = vmatpush3.bf16.msra.mxu0 %v663_v22 }
  0x36   : > { %668 = vmatprep.subr.bf16.mxu0 %v667_v25 }
  0x39   : > { %670 = vmatpush3.bf16.msra.mxu0 %v667_v25 }
  0x3c   : > { %637 = vmatmul.mubr.f32.vlgmr.msra.gmra.mrb[0].mxu0 %v288_v26 }
 0x10f   : > { %v638_v33 = vpop.f32.mrb[0].mxu0 }
 0x110   : > { %v382_v36 = vadd.f32 %v638_v33, %v581_v31  ;;  %v376_v37 = vpop.f32.mrb[1].mxu0 }
 0x111   : > { %v377_v38 = vadd.f32 %v581_v31, %v376_v37 }
 0x112   : > { %vm386_vm0 = vcmp.ge.f32.partialorder %v382_v36, 0.0  ;;  %v393_v39 = vmul.f32 %v582_v34, %v382_v36 }
 0x113   : > { %vm385_vm2 = vcmp.ge.f32.partialorder %v377_v38, 0.0  ;;  %v392_v40 = vmul.f32 %v582_v34, %v377_v38 }
 0x114   : > { %v395_v41 = vsel %vm386_vm0, %v382_v36, %v393_v39 }
 0x115   : > { %v406_v42 = vsel %vm404_vm1, %v395_v41, 0.0  ;;  %v394_v43 = vsel %vm385_vm2, %v377_v38, %v392_v40 }
 0x116   : > { %v419_v44 = vmul.f32 %v406_v42, %v406_v42  ;;  %430 = vst [vmem:[%s835_s15 + $0x8] sm:$0xff] %v406_v42  ;;  %v405_v45 = vsel %vm403_vm3, %v394_v43, 0.0 }
 0x117   : > { %v408_v46 = vadd.f32 %v406_v42, %v405_v45  ;;  %v418_v47 = vmul.f32 %v405_v45, %v405_v45  ;;  %429 = vst [vmem:[%s835_s15] sm:$0xff] %v405_v45 }
 0x119   : > { %v409_v48 = vrot.slane %v408_v46, 4  ;;  %v420_v49 = vadd.f32 %v419_v44, %v418_v47 }
 0x11b   : > { %v410_v50 = vadd.f32 %v409_v48, %v408_v46  ;;  %v421_v51 = vrot.slane %v420_v49, 4 }
 0x11d   : > { %v411_v52 = vrot.slane %v410_v50, 2  ;;  %v422_v53 = vadd.f32 %v421_v51, %v420_v49 }
 0x11f   : > { %v412_v54 = vadd.f32 %v411_v52, %v410_v50  ;;  %v423_v55 = vrot.slane %v422_v53, 2 }
 0x121   : > { %v413_v56 = vrot.slane %v412_v54, 1  ;;  %v424_v57 = vadd.f32 %v423_v55, %v422_v53 }
 0x123   : > { %v414_v59 = vadd.f32 %v413_v56, %v412_v54  ;;  %v425_v60 = vrot.slane %v424_v57, 1 }
 0x125   : > { %v415_v62 = vadd.f32 %v414_v59, %v407_v58  ;;  %v426_v63 = vadd.f32 %v425_v60, %v424_v57 }
 0x127   : > { %416 = vst [vmem:[%s820_s29] sm:$0x1] %v415_v62  ;;  %v427_v0 = vadd.f32 %v426_v63, %v417_v61 }
 0x129   : > { %428 = vst [vmem:[%s825_s7] sm:$0x1] %v427_v0 }
 0x12a PF: > { %s16_s22 = sadd.s32 1, %s751_s22   ;;  %s924_s18 = smov %s743_s20 }
 0x12b   : > { %p13_p8 = scmp.ge.s32.totalorder %s16_s22, 8   ;;  %s925_s19 = smov %s747_s21 }
 0x12c   : > { %s926_s20 = smov %s929_s23  ;;  %s927_s21 = smov %s933_s24 }
 0x12d   :  { %15 = sbr.rel (!%p13_p8) target bundleno = 3 (0x3), region = 90 }

// kernel: _lambda_.4
= control target key start
LH: loop header
LB: loop body
LE: loop exit
PB: predicated region body
PF: predicated region fallthrough
CT: control target
= control target key end

     0   :  { %s882_s24 = smov 0   ;;  %s884_s25 = smov 0   ;;  %s988_s0 = inlined_call_operand.vmem [shape: f32[2,48,128], index: 0, kind: input, shape index: {}]   ;;  %s989_s1 = inlined_call_operand.vmem [shape: f32[2,3,2,128], index: 1, kind: input, shape index: {}]   ;;  %s990_s2 = inlined_call_operand.vmem [shape: f32[2,3,2,128], index: 2, kind: input, shape index: {}]   ;;  %s991_s3 = inlined_call_operand.vmem [shape: f32[2,2,128], index: 3, kind: input, shape index: {}]   ;;  %s992_s4 = inlined_call_operand.vmem [shape: f32[5,128], index: 4, kind: input, shape index: {}]   ;;  %s993_s5 = inlined_call_operand.vmem [shape: f32[2,48,128], index: 5, kind: output, shape index: {0}]   ;;  %s994_s6 = inlined_call_operand.vmem [shape: f32[2,1,128], index: 6, kind: output, shape index: {1}]   ;;  %s995_s7 = inlined_call_operand.vmem [shape: f32[2,1,128], index: 7, kind: output, shape index: {2}]  }
   0x1   :  { %s886_s26 = smov 0   ;;  %s888_s27 = smov 0  }
   0x2   :  { %s890_s28 = smov 0  }
   0x3 LB: > { %998 = sst [smem:[#allocation3_spill]] %s831_s26  ;;  %s27_s29 = sadd.s32 1, %s831_s26  ;;  %s839_s28 = sphi %s890_s28, %s18_s28   ;;  %s835_s27 = sphi %s888_s27, %s1005_s27   ;;  %s831_s26 = sphi %s886_s26, %s1004_s26   ;;  %s827_s25 = sphi %s884_s25, %s1003_s25   ;;  %s823_s24 = sphi %s882_s24, %s1002_s24  }
   0x4   : > { %999 = sst [smem:[#allocation4_spill]] %s835_s27  ;;  %s30_s30 = sadd.s32 1, %s835_s27 }
   0x5   : > { %p28_p0 = scmp.ge.s32.totalorder %s27_s29, 3  ;;  %p735_p1 = scmp.ge.s32.totalorder %s839_s28, 1 }
   0x6   : > { %p302_p2 = scmp.lt.s32.totalorder %s839_s28, 7 }
   0x7   : > { %s1007_s29 = smov (%p28_p0, %s27_s29), 0  ;;  %s1009_s30 = smov (!%p28_p0, %s30_s30), %s835_s27 }
   0x8   : > { %1000 = sst [smem:[#allocation5_spill]] %s1007_s29  ;;  %p303_p3 = pnand %p735_p1, %p302_p2 }
   0x9   : > { %p32_p4 = scmp.ge.s32.totalorder %s1009_s30, 2  ;;  %s736_s8 = sshll.u32 (!%p303_p3), %s823_s24, 1 }
   0xa   : > { %306 = sbr.rel (%p303_p3) target bundleno = 84 (0x54), region = 40  ;;  %p369_p5 = scmp.lt.s32.totalorder (!%p303_p3), %s827_s25, 1 }
   0xb   : > { %s1011_s30 = smov (%p32_p4, %s1009_s30), 0  ;;  %p371_p6 = scmp.lt.s32.totalorder (!%p303_p3), %s736_s8, 5 }
   0xc   : > { %1001 = sst [smem:[#allocation6_spill]] %s1011_s30  ;;  %p380_p7 = scmp.lt.s32.totalorder (!%p303_p3), %s823_s24, 2 }
   0xd   : > { %p743_p8 = scmp.ne.s32.totalorder (!%p303_p3), %s823_s24, 0 }
  0x11   : > { %s1013_s25 = smov (!%p369_p5, %s827_s25), 1  ;;  %s1015_s8 = smov (!%p371_p6, %s736_s8), 5 }
  0x12   : > { %s758_s9 = smul.u32 6, %s1013_s25  ;;  %s740_s10 = sshll.u32 %s1013_s25, 1  ;;  %v841_v0 = vmov (!%p743_p8), 0.0  }
  0x13   : > { %s381_s11 = scalar_select %p380_p7, %s823_s24, 2 }
  0x14   : > { %s374_s12 = sadd.s32 %s758_s9, %s1015_s8  ;;  %s759_s13 = smul.u32 3, %s1013_s25 }
  0x15   : > { %s737_s14 = sshll.u32 %s374_s12, 3  ;;  %s397_s17 = scalar_lea.vmem %s991_s3, %s740_s10 }
  0x16   : > { %s376_s20 = scalar_lea.vmem %s988_s0, %s737_s14  ;;  %s383_s21 = sadd.s32 %s759_s13, %s381_s11 }
  0x17   : > { %s738_s22 = sshll.u32 %s383_s21, 1  ;;  %s926_s29 = scalar_lea.vmem %s993_s5, %s737_s14 }
  0x18   : > { %s385_s8 = scalar_lea.vmem %s989_s1, %s738_s22  ;;  %s393_s15 = scalar_lea.vmem %s990_s2, %s738_s22 }
  0x19   : > { %s937_s18 = scalar_lea.vmem %s994_s6, %s1013_s25  ;;  %s942_s19 = scalar_lea.vmem %s995_s7, %s1013_s25 }
  0x1a   : > { %417 = sbr.rel (%p743_p8) target bundleno = 33 (0x21), region = 44  ;;  %418 = vst [vmem:[%s937_s18] sm:$0x1] (!%p743_p8), %v841_v0  ;;  %419 = vst [vmem:[%s942_s19] sm:$0x1] (!%p743_p8), %v841_v0 }
  0x21 PF: > { %v744_v1 = vld [vmem:[%s397_s17] ss:$0 sm:$0xff]  ;;  %v745_v2 = vld [vmem:[%s397_s17 + $0x1] ss:$0 sm:$0xff]  ;;  %s746_s26 = sshll.u32 %s823_s24, 4  ;;  %v437_v3 = vlaneseq  ;;  %v423_v8 = vld [vmem:[%s376_s20 + $0x8] sm:$0xff] }
  0x22   : > { %v422_v4 = vld [vmem:[%s376_s20] sm:$0xff]  ;;  %s747_s27 = sadd.s32 4294967294, %s746_s26  ;;  %v440_v7 = vstv %s746_s26  ;;  %v429_v13 = vmul.f32 %v744_v1, %v423_v8  ;;  %s757_s25 = sadd.s32 16, %s746_s26 }
  0x23   : > { %v447_v5 = vld [vmem:[%s385_s8] sm:$0x3]  ;;  %v428_v6 = vmul.f32 %v744_v1, %v422_v4  ;;  %v438_v10 = vshrl.u32 %v437_v3, 7  ;;  %v451_v12 = vstv %s747_s27  ;;  %v460_v16 = vstv %s757_s25  ;;  %v751_v34 = vld [vmem:[%s992_s4 + $0x2] ss:$0 sm:$0xff] }
  0x24   : > { %v455_v9 = vld [vmem:[%s393_s15] sm:$0x3]  ;;  %v448_v11 = vmul.f32 %v744_v1, %v447_v5  ;;  %v435_v23 = vadd.f32 %v745_v2, %v429_v13  ;;  %v752_v42 = vld [vmem:[%s992_s4 + $0x3] ss:$0 sm:$0xff]  ;;  %v753_v46 = vld [vmem:[%s992_s4 + $0x4] ss:$0 sm:$0xff] }
  0x25   : > { %v434_v14 = vadd.f32 %v745_v2, %v428_v6  ;;  %v456_v15 = vmul.f32 %v744_v1, %v455_v9  ;;  %v452_v18 = vadd.s32 %v451_v12, %v438_v10  ;;  %v441_v19 = vadd.s32 %v440_v7, %v438_v10  ;;  %v750_v29 = vld [vmem:[%s992_s4 + $0x1] ss:$0 sm:$0xff]  ;;  %v749_v30 = vld [vmem:[%s992_s4] ss:$0 sm:$0xff] }
  0x26   : > { %v449_v17 = vadd.f32 %v745_v2, %v448_v11  ;;  %v439_v20 = vadd.s32 8, %v438_v10  ;;  %v461_v22 = vadd.s32 %v460_v16, %v438_v10  ;;  %v519_v5 = vld [vmem:[%s937_s18] sm:$0x1] }
  0x27   : > { %v457_v21 = vadd.f32 %v745_v2, %v456_v15  ;;  %vm453_vm0 = vcmp.ge.s32.totalorder %v452_v18, 0  ;;  %vm443_vm1 = vcmp.lt.s32.totalorder %v441_v19, 40  ;;  %v529_v8 = vld [vmem:[%s942_s19] sm:$0x1] }
  0x28   : > { %v454_v24 = vsel %vm453_vm0, %v449_v17, 0.0  ;;  %v445_v25 = vsel %vm443_vm1, %v434_v14, 0.0  ;;  %v442_v26 = vadd.s32 %v440_v7, %v439_v20  ;;  %vm462_vm2 = vcmp.lt.s32.totalorder %v461_v22, 40 }
  0x29   : > { %464 = vst [vmem:[#allocation2 + $0x6] sm:$0x3] %v454_v24  ;;  %465 = vst [vmem:[#allocation2 + $0x8] sm:$0xff] %v445_v25  ;;  %v463_v27 = vsel %vm462_vm2, %v457_v21, 0.0  ;;  %v484_v31 = vmul.f32 %v750_v29, %v445_v25 }
  0x2a   : > { %vm444_vm3 = vcmp.lt.s32.totalorder %v442_v26, 40  ;;  %467 = vst [vmem:[#allocation2 + $0x18] sm:$0x3] %v463_v27 }
  0x2b   : > { %v446_v28 = vsel %vm444_vm3, %v435_v23, 0.0 }
  0x2c   : > { %466 = vst [vmem:[#allocation2 + $0x10] sm:$0xff] %v446_v28  ;;  %v485_v35 = vmul.f32 %v750_v29, %v446_v28 }
  0x30   : > { %v468_v32 = vld [vmem:[#allocation2 + $0x6] sm:$0xff] }
  0x31   : > { %v475_v33 = vmul.f32 %v749_v30, %v468_v32 }
  0x33   : > { %v486_v36 = vadd.f32 %v484_v31, %v475_v33  ;;  %v488_v37 = vld [vmem:[#allocation2 + $0xa] sm:$0xff]  ;;  %v489_v39 = vld [vmem:[#allocation2 + $0x12] sm:$0xff] }
  0x34   : > { %v469_v38 = vld [vmem:[#allocation2 + $0xe] sm:$0xff]  ;;  %v495_v40 = vmul.f32 %v751_v34, %v488_v37  ;;  %v496_v45 = vmul.f32 %v751_v34, %v489_v39 }
  0x35   : > { %v476_v41 = vmul.f32 %v749_v30, %v469_v38 }
  0x36   : > { %v497_v43 = vadd.f32 %v495_v40, %v486_v36 }
  0x37   : > { %v487_v44 = vadd.f32 %v485_v35, %v476_v41 }
  0x38   : > { %v504_v47 = vadd.f32 %v752_v42, %v497_v43 }
  0x39   : > { %v498_v48 = vadd.f32 %v496_v45, %v487_v44 }
  0x3a   : > { %vm506_vm4 = vcmp.ge.f32.partialorder %v504_v47, 0.0  ;;  %v513_v49 = vmul.f32 %v753_v46, %v504_v47 }
  0x3b   : > { %v505_v50 = vadd.f32 %v752_v42, %v498_v48 }
  0x3c   : > { %v515_v51 = vsel %vm506_vm4, %v504_v47, %v513_v49 }
  0x3d   : > { %vm507_vm5 = vcmp.ge.f32.partialorder %v505_v50, 0.0  ;;  %v514_v52 = vmul.f32 %v753_v46, %v505_v50  ;;  %v517_v53 = vsel %vm443_vm1, %v515_v51, 0.0 }
  0x3e   : > { %541 = vst [vmem:[%s926_s29] sm:$0xff] %v517_v53  ;;  %v530_v56 = vmul.f32 %v517_v53, %v517_v53 }
  0x3f   : > { %v516_v54 = vsel %vm507_vm5, %v505_v50, %v514_v52 }
  0x40   : > { %v518_v55 = vsel %vm444_vm3, %v516_v54, 0.0 }
  0x41   : > { %v520_v57 = vadd.f32 %v518_v55, %v517_v53  ;;  %v531_v58 = vmul.f32 %v518_v55, %v518_v55  ;;  %542 = vst [vmem:[%s926_s29 + $0x8] sm:$0xff] %v518_v55 }
  0x43   : > { %v521_v59 = vrot.slane %v520_v57, 4  ;;  %v532_v60 = vadd.f32 %v531_v58, %v530_v56 }
  0x45   : > { %v522_v61 = vadd.f32 %v521_v59, %v520_v57  ;;  %v533_v62 = vrot.slane %v532_v60, 4 }
  0x47   : > { %v523_v63 = vrot.slane %v522_v61, 2  ;;  %v534_v0 = vadd.f32 %v533_v62, %v532_v60 }
  0x49   : > { %v524_v1 = vadd.f32 %v523_v63, %v522_v61  ;;  %v535_v2 = vrot.slane %v534_v0, 2 }
  0x4b   : > { %v525_v3 = vrot.slane %v524_v1, 1  ;;  %v536_v4 = vadd.f32 %v535_v2, %v534_v0 }
  0x4d   : > { %v526_v6 = vadd.f32 %v525_v3, %v524_v1  ;;  %v537_v7 = vrot.slane %v536_v4, 1 }
  0x4f   : > { %v527_v9 = vadd.f32 %v526_v6, %v519_v5  ;;  %v538_v10 = vadd.f32 %v537_v7, %v536_v4 }
  0x51   : > { %528 = vst [vmem:[%s937_s18] sm:$0x1] %v527_v9  ;;  %v539_v11 = vadd.f32 %v538_v10, %v529_v8 }
  0x53   : > { %540 = vst [vmem:[%s942_s19] sm:$0x1] %v539_v11 }
  0x54 PF: > { %s18_s28 = sadd.s32 1, %s839_s28   ;;  %s1002_s24 = sld [smem:[#allocation3_spill]] }
  0x55   : > { %p15_p9 = scmp.ge.s32.totalorder %s18_s28, 8   ;;  %s1003_s25 = sld [smem:[#allocation4_spill]] }
  0x56   : > { %s1004_s26 = sld [smem:[#allocation5_spill]]  ;;  %s1005_s27 = sld [smem:[#allocation6_spill]] }
  0x57   :  { %17 = sbr.rel (!%p15_p9) target bundleno = 3 (0x3), region = 107 }

// kernel: _lambda_.5
= control target key start
LH: loop header
LB: loop body
LE: loop exit
PB: predicated region body
PF: predicated region fallthrough
CT: control target
= control target key end

     0   :  { %s780_s18 = smov 0   ;;  %s782_s19 = smov 0   ;;  %s901_s0 = inlined_call_operand.vmem [shape: f32[2,48,128], index: 0, kind: input, shape index: {}]   ;;  %s902_s1 = inlined_call_operand.vmem [shape: f32[2,1,128], index: 1, kind: input, shape index: {}]   ;;  %s903_s2 = inlined_call_operand.vmem [shape: f32[128,128], index: 2, kind: input, shape index: {}]   ;;  %s904_s3 = inlined_call_operand.vmem [shape: f32[2,1,128], index: 3, kind: input, shape index: {}]   ;;  %s905_s4 = inlined_call_operand.vmem [shape: f32[2,48,128], index: 4, kind: input, shape index: {}]   ;;  %s906_s5 = inlined_call_operand.vmem [shape: f32[2,48,128], index: 5, kind: output, shape index: {}]  }
   0x1   :  { %s784_s20 = smov 0   ;;  %s786_s21 = smov 0  }
   0x2   :  { %s788_s22 = smov 0  }
   0x3 LB: > { %s24_s23 = sadd.s32 1, %s740_s20  ;;  %s27_s24 = sadd.s32 1, %s744_s21  ;;  %s748_s22 = sphi %s788_s22, %s15_s22   ;;  %s744_s21 = sphi %s786_s21, %s910_s21   ;;  %s740_s20 = sphi %s784_s20, %s909_s20   ;;  %s736_s19 = sphi %s782_s19, %s908_s19   ;;  %s732_s18 = sphi %s780_s18, %s907_s18  }
   0x4   : > { %p25_p0 = scmp.ge.s32.totalorder %s24_s23, 3  ;;  %p573_p1 = scmp.ge.s32.totalorder %s748_s22, 1 }
   0x5   : > { %p241_p2 = scmp.lt.s32.totalorder %s748_s22, 7 }
   0x6   : > { %s912_s23 = smov (%p25_p0, %s24_s23), 0  ;;  %s914_s24 = smov (!%p25_p0, %s27_s24), %s744_s21 }
   0x7   : > { %p242_p3 = pnand %p573_p1, %p241_p2  ;;  %p29_p4 = scmp.ge.s32.totalorder %s914_s24, 2 }
   0x8   : > { %v339_v0 = vld [vmem:[%s903_s2] sm:$0xff] (!%p242_p3)  ;;  %v340_v1 = vld [vmem:[%s903_s2 + $0x8] sm:$0xff] (!%p242_p3)  ;;  %v341_v2 = vld [vmem:[%s903_s2 + $0x10] sm:$0xff] (!%p242_p3)  ;;  %s574_s6 = sshll.u32 (!%p242_p3), %s732_s18, 1  ;;  %p293_p5 = scmp.lt.s32.totalorder (!%p242_p3), %s736_s19, 1 }
   0x9   : > { %s916_s24 = smov (%p29_p4, %s914_s24), 0  ;;  %245 = sbr.rel (%p242_p3) target bundleno = 262 (0x106), region = 40 }
   0xa   : > { %v637_v3 = vpack.c.bf16 (!%p242_p3), %v340_v1, %v339_v0  ;;  %v342_v4 = vld [vmem:[%s903_s2 + $0x18] sm:$0xff] (!%p242_p3)  ;;  %p295_p6 = scmp.lt.s32.totalorder (!%p242_p3), %s574_s6, 5  ;;  %v343_v6 = vld [vmem:[%s903_s2 + $0x20] sm:$0xff] (!%p242_p3)  ;;  %v344_v7 = vld [vmem:[%s903_s2 + $0x28] sm:$0xff] (!%p242_p3) }
   0xb   : > { %v641_v5 = vpack.c.bf16 (!%p242_p3), %v342_v4, %v341_v2  ;;  %v645_v8 = vpack.c.bf16 (!%p242_p3), %v344_v7, %v343_v6  ;;  %v345_v9 = vld [vmem:[%s903_s2 + $0x30] sm:$0xff] (!%p242_p3)  ;;  %v346_v10 = vld [vmem:[%s903_s2 + $0x38] sm:$0xff] (!%p242_p3)  ;;  %v347_v14 = vld [vmem:[%s903_s2 + $0x40] sm:$0xff] (!%p242_p3) }
   0xc   : > { %638 = vmatprep.subr.bf16.mxu0 (!%p242_p3), %v637_v3  ;;  %v649_v12 = vpack.c.bf16 (!%p242_p3), %v346_v10, %v345_v9  ;;  %v348_v15 = vld [vmem:[%s903_s2 + $0x48] sm:$0xff] (!%p242_p3)  ;;  %v349_v18 = vld [vmem:[%s903_s2 + $0x50] sm:$0xff] (!%p242_p3)  ;;  %v350_v19 = vld [vmem:[%s903_s2 + $0x58] sm:$0xff] (!%p242_p3) }
   0xd   : > { %640 = vmatpush3.bf16.msra.mxu0 (!%p242_p3), %v637_v3  ;;  %v653_v17 = vpack.c.bf16 (!%p242_p3), %v348_v15, %v347_v14  ;;  %v657_v20 = vpack.c.bf16 (!%p242_p3), %v350_v19, %v349_v18  ;;  %v351_v21 = vld [vmem:[%s903_s2 + $0x60] sm:$0xff] (!%p242_p3)  ;;  %v352_v22 = vld [vmem:[%s903_s2 + $0x68] sm:$0xff] (!%p242_p3)  ;;  %v353_v24 = vld [vmem:[%s903_s2 + $0x70] sm:$0xff] (!%p242_p3) }
   0xe   : > { %642 = vmatprep.subr.bf16.mxu0 (!%p242_p3), %v641_v5  ;;  %v661_v23 = vpack.c.bf16 (!%p242_p3), %v352_v22, %v351_v21  ;;  %v354_v25 = vld [vmem:[%s903_s2 + $0x78] sm:$0xff] (!%p242_p3) }
   0xf   : > { %v665_v26 = vpack.c.bf16 (!%p242_p3), %v354_v25, %v353_v24 }
  0x10   : > { %s918_s19 = smov (!%p293_p5, %s736_s19), 1  ;;  %s920_s6 = smov (!%p295_p6, %s574_s6), 5 }
  0x11   : > { %s669_s13 = smul.u32 6, %s918_s19  ;;  %s304_s16 = scalar_lea.vmem %s902_s1, %s918_s19  ;;  %644 = vmatpush3.bf16.msra.mxu0 %v641_v5 }
  0x12   : > { %v580_v11 = vld [vmem:[%s304_s16] ss:$0 sm:$0xff]  ;;  %646 = vmatprep.subr.bf16.mxu0 %v645_v8  ;;  %s307_s9 = scalar_lea.vmem %s904_s3, %s918_s19 }
  0x13   : > { %s298_s27 = sadd.s32 %s669_s13, %s920_s6  ;;  %v581_v29 = vld [vmem:[%s307_s9] ss:$0 sm:$0xff] }
  0x14   : > { %s844_s28 = sshll.u32 %s298_s27, 3 }
  0x15   : > { %s300_s7 = scalar_lea.vmem %s901_s0, %s844_s28  ;;  %648 = vmatpush3.bf16.msra.mxu0 %v645_v8  ;;  %s316_s6 = scalar_lea.vmem %s905_s4, %s844_s28 }
  0x16   : > { %v328_v13 = vld [vmem:[%s300_s7] sm:$0xff]  ;;  %650 = vmatprep.subr.bf16.mxu0 %v649_v12  ;;  %v329_v27 = vld [vmem:[%s300_s7 + $0x8] sm:$0xff]  ;;  %s326_s13 = scalar_lea.vmem %s906_s5, %s844_s28 }
  0x17   : > { %v337_v16 = vmul.f32 %v580_v11, %v328_v13  ;;  %v338_v28 = vmul.f32 %v580_v11, %v329_v27  ;;  %v438_v31 = vld [vmem:[%s316_s6 + $0x8] sm:$0xff]  ;;  %v437_v34 = vld [vmem:[%s316_s6] sm:$0xff] }
  0x19   : > { %634 = vmatprep.mubr.f32.mxu0 %v337_v16  ;;  %652 = vmatpush3.bf16.msra.mxu0 %v649_v12 }
  0x1a   : > { %654 = vmatprep.subr.bf16.mxu0 %v653_v17 }
  0x1d   : > { %656 = vmatpush3.bf16.msra.mxu0 %v653_v17 }
  0x1e   : > { %658 = vmatprep.subr.bf16.mxu0 %v657_v20 }
  0x21   : > { %660 = vmatpush3.bf16.msra.mxu0 %v657_v20 }
  0x22   : > { %662 = vmatprep.subr.bf16.mxu0 %v661_v23 }
  0x25   : > { %664 = vmatpush3.bf16.msra.mxu0 %v661_v23 }
  0x26   : > { %666 = vmatprep.subr.bf16.mxu0 %v665_v26 }
  0x29   : > { %668 = vmatpush3.bf16.msra.mxu0 %v665_v26 }
  0x2c   : > { %635 = vmatmul.mubr.f32.vlgmr.msra.gmra.mrb[0].mxu0 %v338_v28 }
  0xff   : > { %v636_v30 = vpop.f32.mrb[0].mxu0 }
 0x100   : > { %v434_v32 = vadd.f32 %v636_v30, %v581_v29  ;;  %v428_v33 = vpop.f32.mrb[1].mxu0 }
 0x101   : > { %v429_v35 = vadd.f32 %v581_v29, %v428_v33 }
 0x102   : > { %v440_v36 = vadd.f32 %v438_v31, %v434_v32 }
 0x103   : > { %v439_v37 = vadd.f32 %v437_v34, %v429_v35 }
 0x104   : > { %442 = vst [vmem:[%s326_s13 + $0x8] sm:$0xff] %v440_v36 }
 0x105   : > { %441 = vst [vmem:[%s326_s13] sm:$0xff] %v439_v37 }
 0x106 PF: > { %s15_s22 = sadd.s32 1, %s748_s22   ;;  %s907_s18 = smov %s740_s20 }
 0x107   : > { %p12_p7 = scmp.ge.s32.totalorder %s15_s22, 8   ;;  %s908_s19 = smov %s744_s21 }
 0x108   : > { %s909_s20 = smov %s912_s23  ;;  %s910_s21 = smov %s916_s24 }
 0x109   :  { %14 = sbr.rel (!%p12_p7) target bundleno = 3 (0x3), region = 79 }

</bundles_post_ra>
